<compile_context>
chip_gen: v6e
topology: v6e:2x2x1
jax: 0.10.0
libtpu: 0.0.40
codegen_flags: <defaults>
</compile_context>

<pallas_src>
import functools

import jax
import jax.numpy as jnp
from jax.experimental import pallas as pl
from jax.experimental.pallas import tpu as pltpu

# ---- model hyperparameters (small, consistent with the module) -------------
DIM = 32        # hidden dim
MLP_DIM = 64    # mlp dim
DATA_DIM = 16   # data dim
COND_DIM = 32   # cond dim
DEPTH = 2       # number of ModulatedMLP blocks
BATCH = 64

LANE = 128      # lane width: pad the loss output to this for dense stores
MAX_TILE_N = 512  # rows per grid step for large batches (whole batch if smaller)

RMS_EPS = 1e-6  # TODO(synk): archibox RMSNorm eps not specified; using 1e-6.


def _rmsnorm(x, eps=RMS_EPS):
    # RMSNorm(affine=False): x * rsqrt(mean(x^2, -1) + eps)
    return x * jax.lax.rsqrt(jnp.mean(x * x, axis=-1, keepdims=True) + eps)


def _silu(x):
    return x * jax.nn.sigmoid(x)


def vectorflow_kernel(xt_ref, c_ref, vtp_ref,
                      w_in_ref, wk_ref, wc_all_ref, wv_ref, w_outp_ref,
                      loss_ref, *, depth, mlp_dim):
    """One batch tile: in_proj -> depth ModulatedMLP blocks -> out_head -> loss.

    vtp_ref / w_outp_ref / loss_ref are lane-padded to 128 columns; the padded
    columns of w_out are zero, so pt == vt == 0 there and the extra loss
    columns are exactly zero (sliced off by the wrapper).
    """
    xt = xt_ref[...]                      # (tile_n, data_dim) f32
    c = c_ref[...]                        # (tile_n, cond_dim) f32  (= cond + t_emb)

    # h = in_proj(xt)
    h = jnp.dot(xt, w_in_ref[...], preferred_element_type=jnp.float32)

    # Loop-invariant conditioning matmul, hoisted: one (tile_n, depth*mlp_dim)
    # = (tile_n, 128) MXU-friendly product instead of `depth` 64-wide ones.
    mod_all = jnp.dot(c, wc_all_ref[...], preferred_element_type=jnp.float32)

    # ModulatedMLP blocks
    for d in range(depth):
        scores = jnp.dot(_rmsnorm(h), wk_ref[d],
                         preferred_element_type=jnp.float32)          # wk(norm(x))
        mod = mod_all[:, d * mlp_dim:(d + 1) * mlp_dim]                # wc(c), block d
        scores = _silu(scores * (1.0 + mod))                           # act(k*(1+c))
        h = h + jnp.dot(scores, wv_ref[d],
                        preferred_element_type=jnp.float32)            # x + wv(scores)

    # out_head = RMSNorm(affine=False) -> FusedLinear (zero-init), padded to 128 lanes.
    pt = jnp.dot(_rmsnorm(h), w_outp_ref[...], preferred_element_type=jnp.float32)

    diff = pt - vtp_ref[...]
    loss_ref[...] = diff * diff           # full-width (tile_n, 128) dense store


def vectorflow_loss(xt, vt, c, w_in, wk, wc, wv, w_out):
    n, data_dim = xt.shape
    cond_dim = c.shape[-1]
    dim = w_in.shape[-1]
    depth, _, mlp_dim = wk.shape

    # Whole batch per step when it fits comfortably; otherwise 512-row tiles.
    tile_n = n if n <= MAX_TILE_N else MAX_TILE_N
    assert n % tile_n == 0 and tile_n % 8 == 0
    grid = (n // tile_n,)

    # --- wrapper-side layout plumbing (no extra compute in the hot path) ----
    # Fuse the depth-stacked conditioning weights into one (cond_dim, depth*mlp_dim).
    wc_all = jnp.transpose(wc, (1, 0, 2)).reshape(cond_dim, depth * mlp_dim)
    # Zero-pad the output projection and the target to a full 128-lane width.
    w_out_p = jnp.zeros((dim, LANE), jnp.float32).at[:, :data_dim].set(w_out)
    vt_p = jnp.zeros((n, LANE), jnp.float32).at[:, :data_dim].set(vt)

    kernel = functools.partial(vectorflow_kernel, depth=depth, mlp_dim=mlp_dim)

    loss_p = pl.pallas_call(
        kernel,
        out_shape=jax.ShapeDtypeStruct((n, LANE), jnp.float32),
        grid_spec=pltpu.PrefetchScalarGridSpec(
            num_scalar_prefetch=0,
            grid=grid,
            in_specs=[
                pl.BlockSpec((tile_n, data_dim), lambda i: (i, 0)),            # xt
                pl.BlockSpec((tile_n, cond_dim), lambda i: (i, 0)),            # c
                pl.BlockSpec((tile_n, LANE), lambda i: (i, 0)),                # vt (padded)
                pl.BlockSpec((data_dim, dim), lambda i: (0, 0)),               # w_in
                pl.BlockSpec((depth, dim, mlp_dim), lambda i: (0, 0, 0)),      # wk
                pl.BlockSpec((cond_dim, depth * mlp_dim), lambda i: (0, 0)),   # wc (fused)
                pl.BlockSpec((depth, mlp_dim, dim), lambda i: (0, 0, 0)),      # wv
                pl.BlockSpec((dim, LANE), lambda i: (0, 0)),                   # w_out (padded)
            ],
            out_specs=pl.BlockSpec((tile_n, LANE), lambda i: (i, 0)),
        ),
        compiler_params=pltpu.CompilerParams(
            dimension_semantics=("parallel",)),
    )(xt, c, vt_p, w_in, wk, wc_all, wv, w_out_p)

    return loss_p[:, :data_dim]


def time_embed(t, cond_dim, freq_lo=1.0, freq_hi=16.0):
    # t: (..., 1)
    freqs = freq_lo * freq_hi ** jnp.linspace(0.0, 1.0, cond_dim // 2,
                                              dtype=jnp.float32)
    theta = t.astype(jnp.float32) * freqs
    return jnp.concatenate([jnp.sin(theta), jnp.cos(theta)], axis=-1)


def make_params(key):
    """Deterministic parameter init matching VectorFlow.__init__ shapes.
    FusedLinear(in, out) -> weight [in, out]; zero_init=True -> zeros.
    TODO(synk): FusedLinear assumed bias-free (typical for this codebase)."""
    ks = jax.random.split(key, 2 + 3 * DEPTH)
    it = iter(ks)

    def lin(k, d_in, d_out):
        return (jax.random.normal(k, (d_in, d_out), jnp.float32)
                / jnp.sqrt(jnp.float32(d_in)))

    w_in = lin(next(it), DATA_DIM, DIM)
    w_tproj = lin(next(it), COND_DIM, COND_DIM)
    wk = jnp.stack([lin(next(it), DIM, MLP_DIM) for _ in range(DEPTH)])
    wc = jnp.stack([lin(next(it), COND_DIM, MLP_DIM) for _ in range(DEPTH)])
    wv = jnp.zeros((DEPTH, MLP_DIM, DIM), jnp.float32)    # zero_init=True
    w_out = jnp.zeros((DIM, DATA_DIM), jnp.float32)       # zero_init=True
    return w_in, w_tproj, wk, wc, wv, w_out


def vectorflow_forward(inputs, cond, params, key):
    """Mirrors VectorFlow.forward (use_trigflow=False).
    Returns the unreduced per-element squared error, shape [N, data_dim]."""
    w_in, w_tproj, wk, wc, wv, w_out = params
    x1 = inputs.astype(jnp.float32)

    k_t, k_x0 = jax.random.split(key)
    t = jax.nn.sigmoid(jax.random.normal(k_t, inputs.shape[:-1] + (1,),
                                         jnp.float32))
    t_emb = time_embed(t, COND_DIM) @ w_tproj          # t_proj(time_embed(t))
    x0 = jax.random.normal(k_x0, x1.shape, jnp.float32)

    xt = (1.0 - t) * x0 + t * x1
    vt = x1 - x0
    c = cond.astype(jnp.float32) + t_emb

    return vectorflow_loss(xt, vt, c, w_in, wk, wc, wv, w_out)


if __name__ == "__main__":
    root = jax.random.PRNGKey(0)
    k_param, k_in, k_cond, k_noise = jax.random.split(root, 4)

    params = make_params(k_param)
    inputs = jax.random.normal(k_in, (BATCH, DATA_DIM), jnp.float32)
    cond = jax.random.normal(k_cond, (BATCH, COND_DIM), jnp.float32)

    loss = vectorflow_forward(inputs, cond, params, k_noise)
    loss = jax.block_until_ready(loss)
    assert loss.shape == (BATCH, DATA_DIM) and loss.dtype == jnp.float32
    assert bool(jnp.all(jnp.isfinite(loss)))
    print("KERNEL_OK")
</pallas_src>

<mosaic_0001>
module attributes {stable_mosaic.version = 11 : i64} {
  func.func @vectorflow_kernel(%arg0: i32, %arg1: memref<64x16xf32, #tpu.memory_space<vmem>>, %arg2: memref<64x32xf32, #tpu.memory_space<vmem>>, %arg3: memref<64x128xf32, #tpu.memory_space<vmem>>, %arg4: memref<16x32xf32, #tpu.memory_space<vmem>>, %arg5: memref<2x32x64xf32, #tpu.memory_space<vmem>>, %arg6: memref<32x128xf32, #tpu.memory_space<vmem>>, %arg7: memref<2x64x32xf32, #tpu.memory_space<vmem>>, %arg8: memref<32x128xf32, #tpu.memory_space<vmem>>, %arg9: memref<64x128xf32, #tpu.memory_space<vmem>>) attributes {dimension_semantics = [#tpu.dimension_semantics<parallel>], iteration_bounds = array<i64: 1>, scalar_prefetch = 0 : i64, scratch_operands = 0 : i64, tpu.core_type = #tpu.core_type<tc>, window_params = [{transform_indices = @transform_0, window_bounds = array<i64: 64, 16>}, {transform_indices = @transform_1, window_bounds = array<i64: 64, 32>}, {transform_indices = @transform_2, window_bounds = array<i64: 64, 128>}, {pipeline_mode = #tpu.pipeline_mode<synchronous>, transform_indices = @transform_3, window_bounds = array<i64: 16, 32>}, {pipeline_mode = #tpu.pipeline_mode<synchronous>, transform_indices = @transform_4, window_bounds = array<i64: 2, 32, 64>}, {pipeline_mode = #tpu.pipeline_mode<synchronous>, transform_indices = @transform_5, window_bounds = array<i64: 32, 128>}, {pipeline_mode = #tpu.pipeline_mode<synchronous>, transform_indices = @transform_6, window_bounds = array<i64: 2, 64, 32>}, {pipeline_mode = #tpu.pipeline_mode<synchronous>, transform_indices = @transform_7, window_bounds = array<i64: 32, 128>}, {transform_indices = @transform_8, window_bounds = array<i64: 64, 128>}]} {
    %c0 = arith.constant 0 : index
    %c0_0 = arith.constant 0 : index
    %0 = vector.load %arg1[%c0, %c0_0] : memref<64x16xf32, #tpu.memory_space<vmem>>, vector<64x16xf32>
    %c0_1 = arith.constant 0 : index
    %c0_2 = arith.constant 0 : index
    %1 = vector.load %arg2[%c0_1, %c0_2] : memref<64x32xf32, #tpu.memory_space<vmem>>, vector<64x32xf32>
    %c0_3 = arith.constant 0 : index
    %c0_4 = arith.constant 0 : index
    %2 = vector.load %arg4[%c0_3, %c0_4] : memref<16x32xf32, #tpu.memory_space<vmem>>, vector<16x32xf32>
    %cst = arith.constant dense<0.000000e+00> : vector<64x32xf32>
    %3 = tpu.matmul %0, %2, %cst {dimension_numbers = #tpu.dot_dimension_numbers<[1], [0], [0], [1], [0, 0, 1, 1], [], []>} : vector<64x16xf32>, vector<16x32xf32>, vector<64x32xf32> -> vector<64x32xf32>
    %c0_5 = arith.constant 0 : index
    %c0_6 = arith.constant 0 : index
    %4 = vector.load %arg6[%c0_5, %c0_6] : memref<32x128xf32, #tpu.memory_space<vmem>>, vector<32x128xf32>
    %cst_7 = arith.constant dense<0.000000e+00> : vector<64x128xf32>
    %5 = tpu.matmul %1, %4, %cst_7 {dimension_numbers = #tpu.dot_dimension_numbers<[1], [0], [0], [1], [0, 0, 1, 1], [], []>} : vector<64x32xf32>, vector<32x128xf32>, vector<64x128xf32> -> vector<64x128xf32>
    %6 = arith.mulf %3, %3 : vector<64x32xf32>
    %cst_8 = arith.constant dense<0.000000e+00> : vector<64xf32>
    %7 = vector.multi_reduction <add>, %6, %cst_8 [1] : vector<64x32xf32> to vector<64xf32>
    %8 = vector.shape_cast %7 : vector<64xf32> to vector<64x1xf32>
    %cst_9 = arith.constant 3.200000e+01 : f32
    %9 = vector.broadcast %cst_9 : f32 to vector<64x1xf32>
    %10 = arith.divf %8, %9 : vector<64x1xf32>
    %cst_10 = arith.constant 9.99999997E-7 : f32
    %11 = vector.broadcast %cst_10 : f32 to vector<64x1xf32>
    %12 = arith.addf %10, %11 : vector<64x1xf32>
    %13 = math.rsqrt %12 : vector<64x1xf32>
    %14 = vector.broadcast %13 : vector<64x1xf32> to vector<64x32xf32>
    %15 = arith.mulf %3, %14 : vector<64x32xf32>
    %c0_11 = arith.constant 0 : index
    %c0_12 = arith.constant 0 : index
    %c0_13 = arith.constant 0 : index
    %16 = vector.load %arg5[%c0_11, %c0_12, %c0_13] : memref<2x32x64xf32, #tpu.memory_space<vmem>>, vector<1x32x64xf32>
    %17 = vector.shape_cast %16 : vector<1x32x64xf32> to vector<32x64xf32>
    %cst_14 = arith.constant dense<0.000000e+00> : vector<64x64xf32>
    %18 = tpu.matmul %15, %17, %cst_14 {dimension_numbers = #tpu.dot_dimension_numbers<[1], [0], [0], [1], [0, 0, 1, 1], [], []>} : vector<64x32xf32>, vector<32x64xf32>, vector<64x64xf32> -> vector<64x64xf32>
    %19 = vector.extract_strided_slice %5 {offsets = [0, 0], sizes = [64, 64], strides = [1, 1]} : vector<64x128xf32> to vector<64x64xf32>
    %cst_15 = arith.constant 1.000000e+00 : f32
    %20 = vector.broadcast %cst_15 : f32 to vector<64x64xf32>
    %21 = arith.addf %20, %19 : vector<64x64xf32>
    %22 = arith.mulf %18, %21 : vector<64x64xf32>
    %23 = arith.negf %22 : vector<64x64xf32>
    %24 = math.exp %23 : vector<64x64xf32>
    %cst_16 = arith.constant 1.000000e+00 : f32
    %25 = vector.broadcast %cst_16 : f32 to vector<64x64xf32>
    %26 = arith.addf %25, %24 : vector<64x64xf32>
    %27 = arith.divf %25, %26 : vector<64x64xf32>
    %28 = arith.mulf %22, %27 : vector<64x64xf32>
    %c0_17 = arith.constant 0 : index
    %c0_18 = arith.constant 0 : index
    %c0_19 = arith.constant 0 : index
    %29 = vector.load %arg7[%c0_17, %c0_18, %c0_19] : memref<2x64x32xf32, #tpu.memory_space<vmem>>, vector<1x64x32xf32>
    %30 = vector.shape_cast %29 : vector<1x64x32xf32> to vector<64x32xf32>
    %cst_20 = arith.constant dense<0.000000e+00> : vector<64x32xf32>
    %31 = tpu.matmul %28, %30, %cst_20 {dimension_numbers = #tpu.dot_dimension_numbers<[1], [0], [0], [1], [0, 0, 1, 1], [], []>} : vector<64x64xf32>, vector<64x32xf32>, vector<64x32xf32> -> vector<64x32xf32>
    %32 = arith.addf %3, %31 : vector<64x32xf32>
    %33 = arith.mulf %32, %32 : vector<64x32xf32>
    %cst_21 = arith.constant dense<0.000000e+00> : vector<64xf32>
    %34 = vector.multi_reduction <add>, %33, %cst_21 [1] : vector<64x32xf32> to vector<64xf32>
    %35 = vector.shape_cast %34 : vector<64xf32> to vector<64x1xf32>
    %cst_22 = arith.constant 3.200000e+01 : f32
    %36 = vector.broadcast %cst_22 : f32 to vector<64x1xf32>
    %37 = arith.divf %35, %36 : vector<64x1xf32>
    %cst_23 = arith.constant 9.99999997E-7 : f32
    %38 = vector.broadcast %cst_23 : f32 to vector<64x1xf32>
    %39 = arith.addf %37, %38 : vector<64x1xf32>
    %40 = math.rsqrt %39 : vector<64x1xf32>
    %41 = vector.broadcast %40 : vector<64x1xf32> to vector<64x32xf32>
    %42 = arith.mulf %32, %41 : vector<64x32xf32>
    %c1 = arith.constant 1 : index
    %c0_24 = arith.constant 0 : index
    %c0_25 = arith.constant 0 : index
    %43 = vector.load %arg5[%c1, %c0_24, %c0_25] : memref<2x32x64xf32, #tpu.memory_space<vmem>>, vector<1x32x64xf32>
    %44 = vector.shape_cast %43 : vector<1x32x64xf32> to vector<32x64xf32>
    %cst_26 = arith.constant dense<0.000000e+00> : vector<64x64xf32>
    %45 = tpu.matmul %42, %44, %cst_26 {dimension_numbers = #tpu.dot_dimension_numbers<[1], [0], [0], [1], [0, 0, 1, 1], [], []>} : vector<64x32xf32>, vector<32x64xf32>, vector<64x64xf32> -> vector<64x64xf32>
    %46 = vector.extract_strided_slice %5 {offsets = [0, 64], sizes = [64, 64], strides = [1, 1]} : vector<64x128xf32> to vector<64x64xf32>
    %cst_27 = arith.constant 1.000000e+00 : f32
    %47 = vector.broadcast %cst_27 : f32 to vector<64x64xf32>
    %48 = arith.addf %47, %46 : vector<64x64xf32>
    %49 = arith.mulf %45, %48 : vector<64x64xf32>
    %50 = arith.negf %49 : vector<64x64xf32>
    %51 = math.exp %50 : vector<64x64xf32>
    %cst_28 = arith.constant 1.000000e+00 : f32
    %52 = vector.broadcast %cst_28 : f32 to vector<64x64xf32>
    %53 = arith.addf %52, %51 : vector<64x64xf32>
    %54 = arith.divf %52, %53 : vector<64x64xf32>
    %55 = arith.mulf %49, %54 : vector<64x64xf32>
    %c1_29 = arith.constant 1 : index
    %c0_30 = arith.constant 0 : index
    %c0_31 = arith.constant 0 : index
    %56 = vector.load %arg7[%c1_29, %c0_30, %c0_31] : memref<2x64x32xf32, #tpu.memory_space<vmem>>, vector<1x64x32xf32>
    %57 = vector.shape_cast %56 : vector<1x64x32xf32> to vector<64x32xf32>
    %cst_32 = arith.constant dense<0.000000e+00> : vector<64x32xf32>
    %58 = tpu.matmul %55, %57, %cst_32 {dimension_numbers = #tpu.dot_dimension_numbers<[1], [0], [0], [1], [0, 0, 1, 1], [], []>} : vector<64x64xf32>, vector<64x32xf32>, vector<64x32xf32> -> vector<64x32xf32>
    %59 = arith.addf %32, %58 : vector<64x32xf32>
    %60 = arith.mulf %59, %59 : vector<64x32xf32>
    %cst_33 = arith.constant dense<0.000000e+00> : vector<64xf32>
    %61 = vector.multi_reduction <add>, %60, %cst_33 [1] : vector<64x32xf32> to vector<64xf32>
    %62 = vector.shape_cast %61 : vector<64xf32> to vector<64x1xf32>
    %cst_34 = arith.constant 3.200000e+01 : f32
    %63 = vector.broadcast %cst_34 : f32 to vector<64x1xf32>
    %64 = arith.divf %62, %63 : vector<64x1xf32>
    %cst_35 = arith.constant 9.99999997E-7 : f32
    %65 = vector.broadcast %cst_35 : f32 to vector<64x1xf32>
    %66 = arith.addf %64, %65 : vector<64x1xf32>
    %67 = math.rsqrt %66 : vector<64x1xf32>
    %68 = vector.broadcast %67 : vector<64x1xf32> to vector<64x32xf32>
    %69 = arith.mulf %59, %68 : vector<64x32xf32>
    %c0_36 = arith.constant 0 : index
    %c0_37 = arith.constant 0 : index
    %70 = vector.load %arg8[%c0_36, %c0_37] : memref<32x128xf32, #tpu.memory_space<vmem>>, vector<32x128xf32>
    %cst_38 = arith.constant dense<0.000000e+00> : vector<64x128xf32>
    %71 = tpu.matmul %69, %70, %cst_38 {dimension_numbers = #tpu.dot_dimension_numbers<[1], [0], [0], [1], [0, 0, 1, 1], [], []>} : vector<64x32xf32>, vector<32x128xf32>, vector<64x128xf32> -> vector<64x128xf32>
    %c0_39 = arith.constant 0 : index
    %c0_40 = arith.constant 0 : index
    %72 = vector.load %arg3[%c0_39, %c0_40] : memref<64x128xf32, #tpu.memory_space<vmem>>, vector<64x128xf32>
    %73 = arith.subf %71, %72 : vector<64x128xf32>
    %74 = arith.mulf %73, %73 : vector<64x128xf32>
    %c0_41 = arith.constant 0 : index
    %c0_42 = arith.constant 0 : index
    %75 = vector.load %arg9[%c0_41, %c0_42] : memref<64x128xf32, #tpu.memory_space<vmem>>, vector<64x128xf32>
    tpu.vector_store %arg9[%c0_41, %c0_42], %74 {strides = array<i32>} : memref<64x128xf32, #tpu.memory_space<vmem>>, vector<64x128xf32>,
    return
  }
  func.func @transform_0(%arg0: i32) -> (i32, i32) {
    %c0_i32 = arith.constant 0 : i32
    %c0_i32_0 = arith.constant 0 : i32
    return %arg0, %c0_i32 : i32, i32
  }
  func.func @transform_1(%arg0: i32) -> (i32, i32) {
    %c0_i32 = arith.constant 0 : i32
    %c0_i32_0 = arith.constant 0 : i32
    return %arg0, %c0_i32 : i32, i32
  }
  func.func @transform_2(%arg0: i32) -> (i32, i32) {
    %c0_i32 = arith.constant 0 : i32
    %c0_i32_0 = arith.constant 0 : i32
    return %arg0, %c0_i32 : i32, i32
  }
  func.func @transform_3(%arg0: i32) -> (i32, i32) {
    %c0_i32 = arith.constant 0 : i32
    %c0_i32_0 = arith.constant 0 : i32
    %c0_i32_1 = arith.constant 0 : i32
    return %c0_i32, %c0_i32_0 : i32, i32
  }
  func.func @transform_4(%arg0: i32) -> (i32, i32, i32) {
    %c0_i32 = arith.constant 0 : i32
    %c0_i32_0 = arith.constant 0 : i32
    %c0_i32_1 = arith.constant 0 : i32
    %c0_i32_2 = arith.constant 0 : i32
    return %c0_i32, %c0_i32_0, %c0_i32_1 : i32, i32, i32
  }
  func.func @transform_5(%arg0: i32) -> (i32, i32) {
    %c0_i32 = arith.constant 0 : i32
    %c0_i32_0 = arith.constant 0 : i32
    %c0_i32_1 = arith.constant 0 : i32
    return %c0_i32, %c0_i32_0 : i32, i32
  }
  func.func @transform_6(%arg0: i32) -> (i32, i32, i32) {
    %c0_i32 = arith.constant 0 : i32
    %c0_i32_0 = arith.constant 0 : i32
    %c0_i32_1 = arith.constant 0 : i32
    %c0_i32_2 = arith.constant 0 : i32
    return %c0_i32, %c0_i32_0, %c0_i32_1 : i32, i32, i32
  }
  func.func @transform_7(%arg0: i32) -> (i32, i32) {
    %c0_i32 = arith.constant 0 : i32
    %c0_i32_0 = arith.constant 0 : i32
    %c0_i32_1 = arith.constant 0 : i32
    return %c0_i32, %c0_i32_0 : i32, i32
  }
  func.func @transform_8(%arg0: i32) -> (i32, i32) {
    %c0_i32 = arith.constant 0 : i32
    %c0_i32_0 = arith.constant 0 : i32
    return %arg0, %c0_i32 : i32, i32
  }
}

</mosaic_0001>

<bundles_post_ra>
// kernel: tpu_custom_call.1
= control target key start
LH: loop header
LB: loop body
LE: loop exit
PB: predicated region body
PF: predicated region fallthrough
CT: control target
= control target key end

     0   :  { %vm48_vm0 = vcmask 130048   ;;  %s2367_s0 = inlined_call_operand.vmem [shape: f32[64,16], index: 0, kind: input, shape index: {}]   ;;  %s2368_s1 = inlined_call_operand.vmem [shape: f32[64,32], index: 1, kind: input, shape index: {}]   ;;  %s2369_s2 = inlined_call_operand.vmem [shape: f32[64,128], index: 2, kind: input, shape index: {}]   ;;  %s2370_s3 = inlined_call_operand.vmem [shape: f32[16,32], index: 3, kind: input, shape index: {}]   ;;  %s2371_s4 = inlined_call_operand.vmem [shape: f32[2,32,64], index: 4, kind: input, shape index: {}]   ;;  %s2372_s5 = inlined_call_operand.vmem [shape: f32[32,128], index: 5, kind: input, shape index: {}]   ;;  %s2373_s6 = inlined_call_operand.vmem [shape: f32[2,64,32], index: 6, kind: input, shape index: {}]   ;;  %s2374_s7 = inlined_call_operand.vmem [shape: f32[32,128], index: 7, kind: input, shape index: {}]   ;;  %s2375_s8 = inlined_call_operand.hbm [shape: f32[64,128], index: 8, kind: output, shape index: {}]  }
   0x1   :  { %v47_v0 = vld [vmem:[%s2370_s3 + $0x8] sm:$0xff]  ;;  %v46_v1 = vld [vmem:[%s2370_s3] sm:$0xff]  ;;  %v32_v4 = vld [vmem:[%s2367_s0 + $0x10] sm:$0xff] }
   0x2   :  { %v30_v2 = vld [vmem:[%s2367_s0] sm:$0xff]  ;;  %1587 = vmatprep.subr.mxu0 %v47_v0  ;;  %v31_v3 = vld [vmem:[%s2367_s0 + $0x8] sm:$0xff]  ;;  %1739 = vmatprep.subr.mxu1 %v47_v0 }
   0x3   :  { %1591 = vmatprep.mubr.msk.f32.mxu0 %vm48_vm0, %v30_v2  ;;  %1588 = vmatpush3.msra.mxu0 %v47_v0  ;;  %v34_v5 = vld [vmem:[%s2367_s0 + $0x20] sm:$0xff] }
   0x4   :  { %1589 = vmatprep.subr.mxu0 %v46_v1  ;;  %1741 = vmatpush3.msra.mxu1 %v47_v0 }
   0x5   :  { %13 = vsyncpa [#allocation3], 0  ;;  %1590 = vmatpush3.msra.mxu0 %v46_v1  ;;  %1740 = vmatprep.subr.mxu1 %v46_v1  ;;  %v35_v6 = vld [vmem:[%s2367_s0 + $0x28] sm:$0xff]  ;;  %v36_v7 = vld [vmem:[%s2367_s0 + $0x30] sm:$0xff]  ;;  %vm182_vm1 = vcmask 261120   ;;  %vm590_vm2 = vcmask 523264  }
   0x6   :  { %1592 = vmatmul.mubr.msk.f32.vlgmr.msra.gmra.mxu0 %vm48_vm0, %v31_v3  ;;  %1742 = vmatpush3.msra.mxu1 %v46_v1  ;;  %v33_v8 = vld [vmem:[%s2367_s0 + $0x18] sm:$0xff]  ;;  %v180_v35 = vld [vmem:[%s2372_s5 + $0x10] sm:$0xff]  ;;  %v179_v37 = vld [vmem:[%s2372_s5 + $0x8] sm:$0xff]  ;;  %s1881_s28 = smov 64   ;;  %s1882_s15 = smov [#allocation2]  }
   0x7   :  { %1594 = vmatprep.mubr.msk.f32.mxu0 %vm48_vm0, %v32_v4  ;;  %1597 = vmatprep.mubr.msk.f32.mxu1 %vm48_vm0, %v34_v5  ;;  %v37_v9 = vld [vmem:[%s2367_s0 + $0x38] sm:$0xff]  ;;  %v379_v38 = vld [vmem:[%s2371_s4 + $0x10] sm:$0xff]  ;;  %v178_v39 = vld [vmem:[%s2372_s5] sm:$0xff]  ;;  %s1402_s16 = sshll.u32 %s1882_s15, 4  ;;  %s1403_s16 = int_to_ptr.vmem [resolvable:$true] %s1402_s16 }
   0x8   :  { %1598 = vmatmul.mubr.msk.f32.vlgmr.msra.gmra.mxu1 %vm48_vm0, %v35_v6  ;;  %v181_v34 = vld [vmem:[%s2372_s5 + $0x18] sm:$0xff]  ;;  %v38_v40 = vld [vmem:[%s2368_s1] sm:$0xff]  ;;  %v378_v41 = vld [vmem:[%s2371_s4 + $0x8] sm:$0xff]  ;;  %s1859_s17 = scalar_lea.vmem %s1403_s16, 1024  ;;  %p1864_p1 = scmp.lt.s32.totalorder %s1403_s16, %s1403_s16 }
   0x9   :  { %1600 = vmatprep.mubr.msk.f32.mxu1 %vm48_vm0, %v36_v7  ;;  %1603 = vmatprep.subr.mxu1 %v181_v34  ;;  %v380_v36 = vld [vmem:[%s2371_s4 + $0x18] sm:$0xff]  ;;  %v39_v42 = vld [vmem:[%s2368_s1 + $0x8] sm:$0xff]  ;;  %v377_v43 = vld [vmem:[%s2371_s4] sm:$0xff]  ;;  %p1860_p0 = scmp.ne.s32.totalorder %s1403_s16, %s1859_s17  ;;  %p1865_p2 = scmp.lt.s32.totalorder %s1859_s17, %s1859_s17 }
   0xa   :  { %1595 = vmatmul.mubr.msk.f32.gmra.mxu0 %vm48_vm0, %v33_v8  ;;  %1604 = vmatpush3.msra.mxu1 %v181_v34  ;;  %v40_v44 = vld [vmem:[%s2368_s1 + $0x10] sm:$0xff]  ;;  %v41_v45 = vld [vmem:[%s2368_s1 + $0x18] sm:$0xff]  ;;  %v42_v46 = vld [vmem:[%s2368_s1 + $0x20] sm:$0xff] }
   0xb   :  { %1605 = vmatprep.subr.mxu1 %v180_v35  ;;  %1623 = vmatprep.subr.mxu0 %v380_v36  ;;  %v43_v47 = vld [vmem:[%s2368_s1 + $0x28] sm:$0xff]  ;;  %v44_v48 = vld [vmem:[%s2368_s1 + $0x30] sm:$0xff]  ;;  %v45_v49 = vld [vmem:[%s2368_s1 + $0x38] sm:$0xff]  ;;  %p1866_p3 = por %p1865_p2, %p1864_p1 }
   0xc   :  { %1601 = vmatmul.mubr.msk.f32.gmra.mxu1 %vm48_vm0, %v37_v9  ;;  %1624 = vmatpush3.msra.mxu0 %v380_v36  ;;  %v589_v34 = vld [vmem:[%s2373_s6 + $0x38] sm:$0xff]  ;;  %v587_v36 = vld [vmem:[%s2373_s6 + $0x28] sm:$0xff] }
   0xd   :  { %1606 = vmatpush3.msra.mxu1 %v180_v35  ;;  %1625 = vmatprep.subr.mxu0 %v379_v38  ;;  %v588_v35 = vld [vmem:[%s2373_s6 + $0x30] sm:$0xff]  ;;  %p1867_p4 = pnand %p1866_p3, %p1860_p0 }
   0xe   :  { %1607 = vmatprep.subr.mxu1 %v179_v37  ;;  %1626 = vmatpush3.msra.mxu0 %v379_v38  ;;  %v585_v38 = vld [vmem:[%s2373_s6 + $0x18] sm:$0xff] }
   0xf   :  { %1608 = vmatpush3.msra.mxu1 %v179_v37  ;;  %1611 = vmatprep.mubr.msk.f32.mxu1 %vm182_vm1, %v38_v40  ;;  %v586_v37 = vld [vmem:[%s2373_s6 + $0x20] sm:$0xff]  ;;  %v583_v40 = vld [vmem:[%s2373_s6 + $0x8] sm:$0xff] }
  0x10   :  { %1609 = vmatprep.subr.mxu1 %v178_v39  ;;  %1627 = vmatprep.subr.mxu0 %v378_v41 }
  0x11   :  { %1610 = vmatpush3.msra.mxu1 %v178_v39  ;;  %1628 = vmatpush3.msra.mxu0 %v378_v41  ;;  %v584_v39 = vld [vmem:[%s2373_s6 + $0x10] sm:$0xff]  ;;  %v582_v41 = vld [vmem:[%s2373_s6] sm:$0xff] }
  0x12   :  { %1612 = vmatmul.mubr.msk.f32.vlgmr.msra.gmra.mxu1 %vm182_vm1, %v39_v42  ;;  %1629 = vmatprep.subr.mxu0 %v377_v43 }
  0x13   :  { %1630 = vmatpush3.msra.mxu0 %v377_v43  ;;  %1614 = vmatprep.mubr.msk.f32.mxu1 %vm182_vm1, %v40_v44 }
  0x14   :  { %1643 = vmatprep.subr.mxu1 %v589_v34 }
  0x15   :  { %1644 = vmatpush3.msra.mxu1 %v589_v34 }
  0x16   :  { %1615 = vmatmul.mubr.msk.f32.gmra.mxu1 %vm182_vm1, %v41_v45  ;;  %1645 = vmatprep.subr.mxu1 %v588_v35 }
  0x17   :  { %1617 = vmatprep.mubr.msk.f32.mxu1 %vm182_vm1, %v42_v46  ;;  %1646 = vmatpush3.msra.mxu1 %v588_v35 }
  0x18   :  { %1647 = vmatprep.subr.mxu1 %v587_v36 }
  0x19   :  { %1648 = vmatpush3.msra.mxu1 %v587_v36 }
  0x1a   :  { %1618 = vmatmul.mubr.msk.f32.gmra.mxu1 %vm182_vm1, %v43_v47  ;;  %1649 = vmatprep.subr.mxu1 %v586_v37 }
  0x1b   :  { %1620 = vmatprep.mubr.msk.f32.mxu1 %vm182_vm1, %v44_v48  ;;  %1650 = vmatpush3.msra.mxu1 %v586_v37 }
  0x1c   :  { %1651 = vmatprep.subr.mxu1 %v585_v38 }
  0x1d   :  { %1652 = vmatpush3.msra.mxu1 %v585_v38 }
  0x1e   :  { %1621 = vmatmul.mubr.msk.f32.gmra.mxu1 %vm182_vm1, %v45_v49  ;;  %1653 = vmatprep.subr.mxu1 %v584_v39 }
  0x1f   :  { %1654 = vmatpush3.msra.mxu1 %v584_v39 }
  0x20   :  { %1655 = vmatprep.subr.mxu1 %v583_v40 }
  0x21   :  { %1656 = vmatpush3.msra.mxu1 %v583_v40 }
  0x22   :  { %1657 = vmatprep.subr.mxu1 %v582_v41 }
  0x23   :  { %1658 = vmatpush3.msra.mxu1 %v582_v41 }
  0xc6   :  { %v1968_v10 = vpop.f32.mrf.mxu0 }
  0xc7   :  { %v313_v17 = vmul.f32 %v1968_v10, %v1968_v10 }
  0xc8   :  { %v1970_v11 = vpop.f32.mrf.mxu0  ;;  %v1972_v12 = vpop.f32.mrf.mxu1 }
  0xc9   :  { %v312_v13 = vmul.f32 %v1970_v11, %v1970_v11  ;;  %v323_v23 = vsel %vm182_vm1, %v313_v17, 0.0  ;;  %v317_v28 = vmul.f32 %v1972_v12, %v1972_v12 }
  0xca   :  { %v1976_v14 = vpop.f32.mrf.mxu0  ;;  %v1978_v15 = vpop.f32.mrf.mxu1 }
  0xcb   :  { %v320_v16 = vsel %vm182_vm1, %v312_v13, 0.0  ;;  %v316_v21 = vmul.f32 %v1978_v15, %v1978_v15  ;;  %v315_v25 = vmul.f32 %v1976_v14, %v1976_v14  ;;  %v335_v31 = vsel %vm182_vm1, %v317_v28, 0.0 }
  0xcc   :  { %321 = vadd.xlane.f32.xlu0 %v320_v16  ;;  %v1983_v18 = vpop.f32.mrf.mxu0  ;;  %v1985_v19 = vpop.f32.mrf.mxu1 }
  0xcd   :  { %v314_v20 = vmul.f32 %v1983_v18, %v1983_v18  ;;  %v332_v26 = vsel %vm182_vm1, %v316_v21, 0.0  ;;  %v329_v29 = vsel %vm182_vm1, %v315_v25, 0.0  ;;  %v319_v32 = vmul.f32 %v1985_v19, %v1985_v19 }
  0xce   :  { %v1991_v22 = vpop.f32.mrf.mxu1 }
  0xcf   :  { %v326_v24 = vsel %vm182_vm1, %v314_v20, 0.0  ;;  %v318_v27 = vmul.f32 %v1991_v22, %v1991_v22  ;;  %v341_v33 = vsel %vm182_vm1, %v319_v32, 0.0 }
  0xd0   :  { %324 = vadd.xlane.f32.xlu0 %v323_v23  ;;  %327 = vadd.xlane.f32.xlu1 %v326_v24 }
  0xd1   :  { %v338_v30 = vsel %vm182_vm1, %v318_v27, 0.0 }
  0xd2   :  { %v1613_v42 = vpop.f32.mrf.mxu1 }
  0xd3   :  { %v2104_v46 = vadd.f32 1.0, %v1613_v42 }
  0xd4   :  { %333 = vadd.xlane.f32.xlu0 %v332_v26  ;;  %330 = vadd.xlane.f32.xlu1 %v329_v29  ;;  %v273_v43 = vpop.f32.mrf.mxu1 }
  0xd5   :  { %v2106_v49 = vadd.f32 1.0, %v273_v43 }
  0xd6   :  { %v1616_v44 = vpop.f32.mrf.mxu1 }
  0xd8   :  { %339 = vadd.xlane.f32.xlu0 %v338_v30  ;;  %336 = vadd.xlane.f32.xlu1 %v335_v31  ;;  %v283_v45 = vpop.f32.mrf.mxu1 }
  0xda   :  { %v1619_v47 = vpop.f32.mrf.mxu1 }
  0xdc   :  { %342 = vadd.xlane.f32.xlu1 %v341_v33 }
 0x155   :  { %v322_v50 = vpop.xlane.xlu0 %321 }
 0x156   :  { %v345_v51 = vmul.f32 0.03125, %v322_v50 }
 0x158   :  { %v353_v52 = vadd.f32 1e-06, %v345_v51  ;;  %v293_v51 = vpop.f32.mrf.mxu1 }
 0x159   :  { %v325_v53 = vpop.xlane.xlu0 %324  ;;  %v328_v54 = vpop.xlane.xlu1 %327 }
 0x15a   :  { %1747 = vrsqrt.f32 %v353_v52  ;;  %v346_v55 = vmul.f32 0.03125, %v325_v53  ;;  %v347_v56 = vmul.f32 0.03125, %v328_v54  ;;  %v2111_v52 = vadd.f32 1.0, %v1616_v44 }
 0x15c   :  { %v354_v57 = vadd.f32 1e-06, %v346_v55  ;;  %v355_v58 = vadd.f32 1e-06, %v347_v56  ;;  %v2115_v56 = vadd.f32 1.0, %v283_v45 }
 0x15d   :  { %v334_v59 = vpop.xlane.xlu0 %333  ;;  %v331_v60 = vpop.xlane.xlu1 %330 }
 0x15e   :  { %1749 = vrsqrt.f32 %v354_v57  ;;  %v349_v61 = vmul.f32 0.03125, %v334_v59  ;;  %v348_v62 = vmul.f32 0.03125, %v331_v60  ;;  %v1622_v59 = vpop.f32.mrf.mxu1 }
 0x15f   :  { %1751 = vrsqrt.f32 %v355_v58 }
 0x160   :  { %v357_v63 = vadd.f32 1e-06, %v349_v61  ;;  %v356_v0 = vadd.f32 1e-06, %v348_v62  ;;  %v2120_v61 = vadd.f32 1.0, %v1619_v47 }
 0x161   :  { %v340_v1 = vpop.xlane.xlu0 %339  ;;  %v337_v2 = vpop.xlane.xlu1 %336 }
 0x162   :  { %1753 = vrsqrt.f32 %v357_v63  ;;  %v351_v3 = vmul.f32 0.03125, %v340_v1  ;;  %v350_v4 = vmul.f32 0.03125, %v337_v2  ;;  %v2124_v1 = vadd.f32 1.0, %v293_v51 }
 0x163   :  { %1755 = vrsqrt.f32 %v356_v0 }
 0x164   :  { %v359_v5 = vadd.f32 1e-06, %v351_v3  ;;  %v358_v6 = vadd.f32 1e-06, %v350_v4  ;;  %v303_v3 = vpop.f32.mrf.mxu1 }
 0x165   :  { %v343_v7 = vpop.xlane.xlu1 %342 }
 0x166   :  { %1757 = vrsqrt.f32 %v359_v5  ;;  %v352_v8 = vmul.f32 0.03125, %v343_v7 }
 0x167   :  { %v1748_v9 = vpop.eup %1747  ;;  %1759 = vrsqrt.f32 %v358_v6  ;;  %v2127_v6 = vadd.f32 1.0, %v1622_v59 }
 0x168   :  { %v360_v13 = vadd.f32 1e-06, %v352_v8  ;;  %v369_v16 = vmul.f32 %v1748_v9, %v1970_v11 }
 0x16a   :  { %1761 = vrsqrt.f32 %v360_v13  ;;  %1631 = vmatprep.mubr.msk.f32.mxu0 %vm182_vm1, %v369_v16  ;;  %v2130_v13 = vadd.f32 1.0, %v303_v3 }
 0x16b   :  { %v1750_v17 = vpop.eup %1749 }
 0x16c   :  { %v1752_v20 = vpop.eup %1751  ;;  %v370_v21 = vmul.f32 %v1750_v17, %v1968_v10 }
 0x16d   :  { %v371_v23 = vmul.f32 %v1752_v20, %v1983_v18 }
 0x16e   :  { %1632 = vmatmul.mubr.msk.f32.vlgmr.msra.gmra.mxu0 %vm182_vm1, %v370_v21 }
 0x16f   :  { %v1754_v24 = vpop.eup %1753  ;;  %1634 = vmatprep.mubr.msk.f32.mxu0 %vm182_vm1, %v371_v23 }
 0x170   :  { %v1756_v25 = vpop.eup %1755  ;;  %v373_v26 = vmul.f32 %v1754_v24, %v1978_v15 }
 0x171   :  { %v372_v27 = vmul.f32 %v1756_v25, %v1976_v14 }
 0x173   :  { %v1758_v28 = vpop.eup %1757  ;;  %1635 = vmatmul.mubr.msk.f32.gmra.mxu0 %vm182_vm1, %v372_v27 }
 0x174   :  { %v1760_v29 = vpop.eup %1759  ;;  %1637 = vmatprep.mubr.msk.f32.mxu0 %vm182_vm1, %v373_v26  ;;  %v375_v30 = vmul.f32 %v1758_v28, %v1991_v22 }
 0x175   :  { %v374_v31 = vmul.f32 %v1760_v29, %v1972_v12 }
 0x177   :  { %v1762_v32 = vpop.eup %1761  ;;  %1638 = vmatmul.mubr.msk.f32.gmra.mxu0 %vm182_vm1, %v374_v31 }
 0x178   :  { %1640 = vmatprep.mubr.msk.f32.mxu0 %vm182_vm1, %v375_v30  ;;  %v376_v33 = vmul.f32 %v1762_v32, %v1985_v19 }
 0x17b   :  { %1641 = vmatmul.mubr.msk.f32.gmra.mxu0 %vm182_vm1, %v376_v33 }
 0x22e   :  { %v1633_v48 = vpop.f32.mrf.mxu0 }
 0x22f   :  { %v2109_v50 = vmul.f32 %v1633_v48, %v2104_v46 }
 0x230   :  { %v471_v53 = vpop.f32.mrf.mxu0 }
 0x231   :  { %v1438_v54 = vmul.f32 -1.442695, %v2109_v50  ;;  %v518_v55 = vmul.f32 %v2106_v49, %v471_v53 }
 0x233   :  { %1763 = vpow2.f32 %v1438_v54  ;;  %v1437_v57 = vmul.f32 -1.442695, %v518_v55  ;;  %v1636_v58 = vpop.f32.mrf.mxu0 }
 0x234   :  { %v2118_v60 = vmul.f32 %v1636_v58, %v2111_v52 }
 0x235   :  { %1765 = vpow2.f32 %v1437_v57  ;;  %v481_v62 = vpop.f32.mrf.mxu0 }
 0x236   :  { %v1440_v63 = vmul.f32 -1.442695, %v2118_v60  ;;  %v520_v0 = vmul.f32 %v2115_v56, %v481_v62 }
 0x237   :  { %v1639_v2 = vpop.f32.mrf.mxu0 }
 0x238   :  { %1767 = vpow2.f32 %v1440_v63  ;;  %v1439_v4 = vmul.f32 -1.442695, %v520_v0  ;;  %v523_v5 = vmul.f32 %v1639_v2, %v2120_v61 }
 0x239   :  { %v491_v7 = vpop.f32.mrf.mxu0 }
 0x23a   :  { %1769 = vpow2.f32 %v1439_v4  ;;  %v1442_v8 = vmul.f32 -1.442695, %v523_v5  ;;  %v522_v9 = vmul.f32 %v2124_v1, %v491_v7 }
 0x23b   :  { %v1642_v16 = vpop.f32.mrf.mxu0 }
 0x23c   :  { %1771 = vpow2.f32 %v1442_v8  ;;  %v1441_v17 = vmul.f32 -1.442695, %v522_v9  ;;  %v525_v20 = vmul.f32 %v1642_v16, %v2127_v6 }
 0x23d   :  { %v501_v21 = vpop.f32.mrf.mxu0 }
 0x23e   :  { %1773 = vpow2.f32 %v1441_v17  ;;  %v1444_v23 = vmul.f32 -1.442695, %v525_v20  ;;  %v524_v24 = vmul.f32 %v2130_v13, %v501_v21 }
 0x240   :  { %v1764_v25 = vpop.eup %1763  ;;  %1775 = vpow2.f32 %v1444_v23  ;;  %v1443_v26 = vmul.f32 -1.442695, %v524_v24 }
 0x241   :  { %v551_v27 = vadd.f32 1.0, %v1764_v25 }
 0x242   :  { %v1766_v28 = vpop.eup %1765  ;;  %1777 = vpow2.f32 %v1443_v26 }
 0x243   :  { %v550_v29 = vadd.f32 1.0, %v1766_v28  ;;  %1779 = vrcp.f32 %v551_v27 }
 0x245   :  { %v1768_v30 = vpop.eup %1767  ;;  %1781 = vrcp.f32 %v550_v29 }
 0x246   :  { %v553_v31 = vadd.f32 1.0, %v1768_v30 }
 0x247   :  { %v1770_v32 = vpop.eup %1769 }
 0x248   :  { %v552_v33 = vadd.f32 1.0, %v1770_v32  ;;  %1783 = vrcp.f32 %v553_v31 }
 0x249   :  { %v1772_v34 = vpop.eup %1771 }
 0x24a   :  { %1785 = vrcp.f32 %v552_v33  ;;  %v555_v35 = vadd.f32 1.0, %v1772_v34 }
 0x24b   :  { %v1774_v36 = vpop.eup %1773 }
 0x24c   :  { %v554_v37 = vadd.f32 1.0, %v1774_v36  ;;  %1787 = vrcp.f32 %v555_v35  ;;  %v1455_v35 = vld [vmem:[%s2371_s4 + $0x30] sm:$0xff]  ;;  %v1454_v36 = vld [vmem:[%s2371_s4 + $0x28] sm:$0xff] }
 0x24d   :  { %v1776_v38 = vpop.eup %1775 }
 0x24e   :  { %1789 = vrcp.f32 %v554_v37  ;;  %v557_v39 = vadd.f32 1.0, %v1776_v38  ;;  %v1453_v37 = vld [vmem:[%s2371_s4 + $0x20] sm:$0xff] }
 0x24f   :  { %v1778_v40 = vpop.eup %1777 }
 0x250   :  { %v556_v41 = vadd.f32 1.0, %v1778_v40  ;;  %v1780_v42 = vpop.eup %1779  ;;  %1791 = vrcp.f32 %v557_v39 }
 0x251   :  { %v575_v45 = vmul.f32 %v1780_v42, %v2109_v50 }
 0x252   :  { %v1782_v43 = vpop.eup %1781  ;;  %1793 = vrcp.f32 %v556_v41 }
 0x253   :  { %v574_v44 = vmul.f32 %v1782_v43, %v518_v55 }
 0x255   :  { %1659 = vmatprep.mubr.msk.f32.mxu1 %vm590_vm2, %v574_v44  ;;  %v1784_v47 = vpop.eup %1783 }
 0x256   :  { %1660 = vmatmul.mubr.msk.f32.vlgmr.msra.gmra.mxu1 %vm590_vm2, %v575_v45  ;;  %v577_v53 = vmul.f32 %v1784_v47, %v2118_v60 }
 0x257   :  { %v1786_v48 = vpop.eup %1785 }
 0x258   :  { %v576_v51 = vmul.f32 %v1786_v48, %v520_v0 }
 0x259   :  { %v1788_v54 = vpop.eup %1787 }
 0x25a   :  { %1662 = vmatprep.mubr.msk.f32.mxu1 %vm590_vm2, %v576_v51  ;;  %v579_v59 = vmul.f32 %v1788_v54, %v523_v5 }
 0x25b   :  { %v1790_v57 = vpop.eup %1789  ;;  %1663 = vmatmul.mubr.msk.f32.gmra.mxu1 %vm590_vm2, %v577_v53 }
 0x25c   :  { %v578_v58 = vmul.f32 %v1790_v57, %v522_v9 }
 0x25d   :  { %v1792_v55 = vpop.eup %1791 }
 0x25e   :  { %1665 = vmatprep.mubr.msk.f32.mxu1 %vm590_vm2, %v578_v58  ;;  %v581_v63 = vmul.f32 %v1792_v55, %v525_v20 }
 0x25f   :  { %v1794_v50 = vpop.eup %1793  ;;  %1666 = vmatmul.mubr.msk.f32.gmra.mxu1 %vm590_vm2, %v579_v59 }
 0x260   :  { %v580_v62 = vmul.f32 %v1794_v50, %v524_v24 }
 0x262   :  { %1668 = vmatprep.mubr.msk.f32.mxu1 %vm590_vm2, %v580_v62 }
 0x263   :  { %1669 = vmatmul.mubr.msk.f32.gmra.mxu1 %vm590_vm2, %v581_v63 }
 0x316   :  { %v1661_v60 = vpop.f32.mrf.mxu1 }
 0x317   :  { %v2145_v0 = vadd.f32 %v1661_v60, %v1968_v10 }
 0x318   :  { %v681_v2 = vpop.f32.mrf.mxu1 }
 0x319   :  { %v2148_v3 = vadd.f32 %v681_v2, %v1970_v11  ;;  %v729_v4 = vmul.f32 %v2145_v0, %v2145_v0 }
 0x31b   :  { %v1664_v5 = vpop.f32.mrf.mxu1  ;;  %v739_v7 = vsel %vm182_vm1, %v729_v4, 0.0  ;;  %v728_v8 = vmul.f32 %v2148_v3, %v2148_v3 }
 0x31c   :  { %v2156_v9 = vadd.f32 %v1664_v5, %v1976_v14  ;;  %740 = vadd.xlane.f32.xlu1 %v739_v7 }
 0x31d   :  { %v691_v16 = vpop.f32.mrf.mxu1  ;;  %v736_v10 = vsel %vm182_vm1, %v728_v8, 0.0 }
 0x31e   :  { %v2160_v17 = vadd.f32 %v691_v16, %v1983_v18  ;;  %737 = vadd.xlane.f32.xlu0 %v736_v10  ;;  %v731_v11 = vmul.f32 %v2156_v9, %v2156_v9 }
 0x31f   :  { %v1667_v20 = vpop.f32.mrf.mxu1 }
 0x320   :  { %v2165_v21 = vadd.f32 %v1667_v20, %v1972_v12  ;;  %v745_v23 = vsel %vm182_vm1, %v731_v11, 0.0  ;;  %v730_v14 = vmul.f32 %v2160_v17, %v2160_v17 }
 0x321   :  { %746 = vadd.xlane.f32.xlu1 %v745_v23  ;;  %v701_v24 = vpop.f32.mrf.mxu1 }
 0x322   :  { %v2171_v25 = vadd.f32 %v701_v24, %v1978_v15  ;;  %v742_v18 = vsel %vm182_vm1, %v730_v14, 0.0  ;;  %v733_v26 = vmul.f32 %v2165_v21, %v2165_v21  ;;  %v1480_v24 = vld [vmem:[%s2373_s6 + $0x78] sm:$0xff] }
 0x323   :  { %743 = vadd.xlane.f32.xlu0 %v742_v18  ;;  %v1670_v27 = vpop.f32.mrf.mxu1  ;;  %1691 = vmatprep.subr.mxu1 %v1480_v24  ;;  %v1479_v18 = vld [vmem:[%s2373_s6 + $0x70] sm:$0xff] }
 0x324   :  { %v2177_v12 = vadd.f32 %v1670_v27, %v1985_v19  ;;  %v751_v28 = vsel %vm182_vm1, %v733_v26, 0.0  ;;  %v732_v29 = vmul.f32 %v2171_v25, %v2171_v25  ;;  %1692 = vmatpush3.msra.mxu1 %v1480_v24  ;;  %v1478_v26 = vld [vmem:[%s2373_s6 + $0x68] sm:$0xff]  ;;  %v1477_v27 = vld [vmem:[%s2373_s6 + $0x60] sm:$0xff] }
 0x325   :  { %752 = vadd.xlane.f32.xlu1 %v751_v28  ;;  %v711_v30 = vpop.f32.mrf.mxu1  ;;  %1693 = vmatprep.subr.mxu1 %v1479_v18  ;;  %v1476_v28 = vld [vmem:[%s2373_s6 + $0x58] sm:$0xff] }
 0x326   :  { %v2183_v15 = vadd.f32 %v711_v30, %v1991_v22  ;;  %v748_v31 = vsel %vm182_vm1, %v732_v29, 0.0  ;;  %v735_v32 = vmul.f32 %v2177_v12, %v2177_v12  ;;  %v1456_v22 = vld [vmem:[%s2371_s4 + $0x38] sm:$0xff]  ;;  %1694 = vmatpush3.msra.mxu1 %v1479_v18  ;;  %v1475_v29 = vld [vmem:[%s2373_s6 + $0x50] sm:$0xff]  ;;  %v1474_v30 = vld [vmem:[%s2373_s6 + $0x48] sm:$0xff] }
 0x327   :  { %749 = vadd.xlane.f32.xlu0 %v748_v31  ;;  %1671 = vmatprep.subr.mxu0 %v1456_v22  ;;  %v1473_v31 = vld [vmem:[%s2373_s6 + $0x40] sm:$0xff] }
 0x328   :  { %v757_v33 = vsel %vm182_vm1, %v735_v32, 0.0  ;;  %v734_v19 = vmul.f32 %v2183_v15, %v2183_v15  ;;  %1672 = vmatpush3.msra.mxu0 %v1456_v22  ;;  %1695 = vmatprep.subr.mxu1 %v1478_v26 }
 0x329   :  { %758 = vadd.xlane.f32.xlu1 %v757_v33  ;;  %1673 = vmatprep.subr.mxu0 %v1455_v35 }
 0x32a   :  { %v754_v34 = vsel %vm182_vm1, %v734_v19, 0.0  ;;  %1674 = vmatpush3.msra.mxu0 %v1455_v35  ;;  %1696 = vmatpush3.msra.mxu1 %v1478_v26 }
 0x32b   :  { %755 = vadd.xlane.f32.xlu0 %v754_v34  ;;  %1675 = vmatprep.subr.mxu0 %v1454_v36 }
 0x32c   :  { %1676 = vmatpush3.msra.mxu0 %v1454_v36  ;;  %1697 = vmatprep.subr.mxu1 %v1477_v27 }
 0x32d   :  { %1677 = vmatprep.subr.mxu0 %v1453_v37  ;;  %1698 = vmatpush3.msra.mxu1 %v1477_v27 }
 0x32e   :  { %1678 = vmatpush3.msra.mxu0 %v1453_v37  ;;  %1699 = vmatprep.subr.mxu1 %v1476_v28 }
 0x32f   :  { %1700 = vmatpush3.msra.mxu1 %v1476_v28 }
 0x330   :  { %1701 = vmatprep.subr.mxu1 %v1475_v29 }
 0x331   :  { %1702 = vmatpush3.msra.mxu1 %v1475_v29 }
 0x332   :  { %1703 = vmatprep.subr.mxu1 %v1474_v30 }
 0x333   :  { %1704 = vmatpush3.msra.mxu1 %v1474_v30 }
 0x334   :  { %1705 = vmatprep.subr.mxu1 %v1473_v31 }
 0x335   :  { %1706 = vmatpush3.msra.mxu1 %v1473_v31 }
 0x33a   :  { %936 = vrot.lane.b32.xlu1 %v2104_v46, %s1881_s28 }
 0x33e   :  { %938 = vrot.lane.b32.xlu1 %v2115_v56, %s1881_s28 }
 0x341   :  { %934 = vrot.lane.b32.xlu0 %v2106_v49, %s1881_s28 }
 0x342   :  { %940 = vrot.lane.b32.xlu1 %v2111_v52, %s1881_s28 }
 0x345   :  { %942 = vrot.lane.b32.xlu0 %v2124_v1, %s1881_s28 }
 0x346   :  { %944 = vrot.lane.b32.xlu1 %v2120_v61, %s1881_s28 }
 0x349   :  { %946 = vrot.lane.b32.xlu0 %v2130_v13, %s1881_s28 }
 0x34a   :  { %948 = vrot.lane.b32.xlu1 %v2127_v6, %s1881_s28 }
 0x3a5   :  { %v741_v38 = vpop.xlane.xlu1 %740 }
 0x3a6   :  { %v761_v46 = vmul.f32 0.03125, %v741_v38 }
 0x3a7   :  { %v738_v39 = vpop.xlane.xlu0 %737 }
 0x3a8   :  { %v769_v40 = vadd.f32 1e-06, %v761_v46  ;;  %v760_v41 = vmul.f32 0.03125, %v738_v39 }
 0x3aa   :  { %v768_v42 = vadd.f32 1e-06, %v760_v41  ;;  %v747_v43 = vpop.xlane.xlu1 %746  ;;  %1795 = vrsqrt.f32 %v769_v40 }
 0x3ab   :  { %v763_v56 = vmul.f32 0.03125, %v747_v43 }
 0x3ac   :  { %1797 = vrsqrt.f32 %v768_v42  ;;  %v744_v49 = vpop.xlane.xlu0 %743 }
 0x3ad   :  { %v771_v52 = vadd.f32 1e-06, %v763_v56  ;;  %v762_v44 = vmul.f32 0.03125, %v744_v49 }
 0x3ae   :  { %v753_v1 = vpop.xlane.xlu1 %752 }
 0x3af   :  { %v770_v45 = vadd.f32 1e-06, %v762_v44  ;;  %v765_v61 = vmul.f32 0.03125, %v753_v1  ;;  %1799 = vrsqrt.f32 %v771_v52 }
 0x3b0   :  { %v750_v13 = vpop.xlane.xlu0 %749 }
 0x3b1   :  { %1801 = vrsqrt.f32 %v770_v45  ;;  %v773_v6 = vadd.f32 1e-06, %v765_v61  ;;  %v764_v47 = vmul.f32 0.03125, %v750_v13 }
 0x3b2   :  { %v759_v48 = vpop.xlane.xlu1 %758 }
 0x3b3   :  { %v772_v51 = vadd.f32 1e-06, %v764_v47  ;;  %v767_v53 = vmul.f32 0.03125, %v759_v48  ;;  %1803 = vrsqrt.f32 %v773_v6 }
 0x3b4   :  { %v756_v54 = vpop.xlane.xlu0 %755 }
 0x3b5   :  { %1805 = vrsqrt.f32 %v772_v51  ;;  %v775_v57 = vadd.f32 1e-06, %v767_v53  ;;  %v766_v58 = vmul.f32 0.03125, %v756_v54 }
 0x3b6   :  { %v937_v32 = vpop.permute.xlu1 %936 }
 0x3b7   :  { %v774_v59 = vadd.f32 1e-06, %v766_v58  ;;  %v1796_v55 = vpop.eup %1795  ;;  %1807 = vrsqrt.f32 %v775_v57 }
 0x3b8   :  { %v785_v63 = vmul.f32 %v1796_v55, %v2145_v0  ;;  %v935_v35 = vpop.permute.xlu0 %934 }
 0x3b9   :  { %v1798_v50 = vpop.eup %1797  ;;  %1809 = vrsqrt.f32 %v774_v59 }
 0x3ba   :  { %v784_v62 = vmul.f32 %v1798_v50, %v2148_v3  ;;  %v939_v33 = vpop.permute.xlu1 %938 }
 0x3bc   :  { %1679 = vmatprep.mubr.msk.f32.mxu0 %vm182_vm1, %v784_v62  ;;  %v1800_v60 = vpop.eup %1799  ;;  %v943_v49 = vpop.permute.xlu0 %942 }
 0x3bd   :  { %1680 = vmatmul.mubr.msk.f32.vlgmr.msra.gmra.mxu0 %vm182_vm1, %v785_v63  ;;  %v787_v5 = vmul.f32 %v1800_v60, %v2156_v9 }
 0x3be   :  { %v1802_v2 = vpop.eup %1801  ;;  %v941_v34 = vpop.permute.xlu1 %940 }
 0x3bf   :  { %v786_v4 = vmul.f32 %v1802_v2, %v2160_v17 }
 0x3c0   :  { %v1804_v7 = vpop.eup %1803  ;;  %v947_v53 = vpop.permute.xlu0 %946 }
 0x3c1   :  { %1682 = vmatprep.mubr.msk.f32.mxu0 %vm182_vm1, %v786_v4  ;;  %v789_v10 = vmul.f32 %v1804_v7, %v2165_v21 }
 0x3c2   :  { %v1806_v8 = vpop.eup %1805  ;;  %1683 = vmatmul.mubr.msk.f32.gmra.mxu0 %vm182_vm1, %v787_v5  ;;  %v945_v41 = vpop.permute.xlu1 %944 }
 0x3c3   :  { %v788_v16 = vmul.f32 %v1806_v8, %v2171_v25 }
 0x3c4   :  { %v1808_v11 = vpop.eup %1807 }
 0x3c5   :  { %1685 = vmatprep.mubr.msk.f32.mxu0 %vm182_vm1, %v788_v16  ;;  %v791_v14 = vmul.f32 %v1808_v11, %v2177_v12 }
 0x3c6   :  { %v1810_v20 = vpop.eup %1809  ;;  %1686 = vmatmul.mubr.msk.f32.gmra.mxu0 %vm182_vm1, %v789_v10  ;;  %v949_v6 = vpop.permute.xlu1 %948 }
 0x3c7   :  { %v790_v23 = vmul.f32 %v1810_v20, %v2183_v15 }
 0x3c9   :  { %1688 = vmatprep.mubr.msk.f32.mxu0 %vm182_vm1, %v790_v23 }
 0x3ca   :  { %1689 = vmatmul.mubr.msk.f32.gmra.mxu0 %vm182_vm1, %v791_v14 }
 0x47d   :  { %v1681_v19 = vpop.f32.mrf.mxu0 }
 0x47e   :  { %v2252_v22 = vmul.f32 %v1681_v19, %v937_v32 }
 0x47f   :  { %v887_v36 = vpop.f32.mrf.mxu0 }
 0x480   :  { %v1466_v37 = vmul.f32 -1.442695, %v2252_v22  ;;  %v958_v38 = vmul.f32 %v935_v35, %v887_v36 }
 0x482   :  { %1811 = vpow2.f32 %v1466_v37  ;;  %v1465_v46 = vmul.f32 -1.442695, %v958_v38  ;;  %v1684_v39 = vpop.f32.mrf.mxu0 }
 0x483   :  { %v961_v40 = vmul.f32 %v1684_v39, %v941_v34 }
 0x484   :  { %1813 = vpow2.f32 %v1465_v46  ;;  %v897_v42 = vpop.f32.mrf.mxu0 }
 0x485   :  { %v1468_v43 = vmul.f32 -1.442695, %v961_v40  ;;  %v960_v56 = vmul.f32 %v939_v33, %v897_v42 }
 0x486   :  { %v1687_v52 = vpop.f32.mrf.mxu0 }
 0x487   :  { %1815 = vpow2.f32 %v1468_v43  ;;  %v1467_v44 = vmul.f32 -1.442695, %v960_v56  ;;  %v963_v1 = vmul.f32 %v1687_v52, %v945_v41 }
 0x488   :  { %v907_v45 = vpop.f32.mrf.mxu0 }
 0x489   :  { %1817 = vpow2.f32 %v1467_v44  ;;  %v1470_v61 = vmul.f32 -1.442695, %v963_v1  ;;  %v962_v13 = vmul.f32 %v943_v49, %v907_v45 }
 0x48a   :  { %v1690_v47 = vpop.f32.mrf.mxu0 }
 0x48b   :  { %1819 = vpow2.f32 %v1470_v61  ;;  %v1469_v48 = vmul.f32 -1.442695, %v962_v13  ;;  %v965_v51 = vmul.f32 %v1690_v47, %v949_v6 }
 0x48c   :  { %v917_v54 = vpop.f32.mrf.mxu0 }
 0x48d   :  { %1821 = vpow2.f32 %v1469_v48  ;;  %v1472_v57 = vmul.f32 -1.442695, %v965_v51  ;;  %v964_v58 = vmul.f32 %v947_v53, %v917_v54 }
 0x48f   :  { %v1812_v59 = vpop.eup %1811  ;;  %1823 = vpow2.f32 %v1472_v57  ;;  %v1471_v55 = vmul.f32 -1.442695, %v964_v58 }
 0x490   :  { %v991_v50 = vadd.f32 1.0, %v1812_v59 }
 0x491   :  { %v1814_v62 = vpop.eup %1813  ;;  %1825 = vpow2.f32 %v1471_v55 }
 0x492   :  { %v990_v63 = vadd.f32 1.0, %v1814_v62  ;;  %1827 = vrcp.f32 %v991_v50  ;;  %v1234_v50 = vld [vmem:[%s2374_s7 + $0x10] sm:$0xff]  ;;  %v1233_v62 = vld [vmem:[%s2374_s7 + $0x8] sm:$0xff] }
 0x494   :  { %v1816_v60 = vpop.eup %1815  ;;  %1829 = vrcp.f32 %v990_v63  ;;  %v1232_v63 = vld [vmem:[%s2374_s7] sm:$0xff] }
 0x495   :  { %v993_v2 = vadd.f32 1.0, %v1816_v60 }
 0x496   :  { %v1818_v4 = vpop.eup %1817 }
 0x497   :  { %v992_v5 = vadd.f32 1.0, %v1818_v4  ;;  %1831 = vrcp.f32 %v993_v2 }
 0x498   :  { %v1820_v7 = vpop.eup %1819 }
 0x499   :  { %1833 = vrcp.f32 %v992_v5  ;;  %v995_v8 = vadd.f32 1.0, %v1820_v7 }
 0x49a   :  { %v1822_v16 = vpop.eup %1821 }
 0x49b   :  { %v994_v10 = vadd.f32 1.0, %v1822_v16  ;;  %1835 = vrcp.f32 %v995_v8 }
 0x49c   :  { %v1824_v11 = vpop.eup %1823 }
 0x49d   :  { %1837 = vrcp.f32 %v994_v10  ;;  %v997_v20 = vadd.f32 1.0, %v1824_v11 }
 0x49e   :  { %v1826_v23 = vpop.eup %1825 }
 0x49f   :  { %v996_v14 = vadd.f32 1.0, %v1826_v23  ;;  %v1828_v24 = vpop.eup %1827  ;;  %1839 = vrcp.f32 %v997_v20 }
 0x4a0   :  { %v1015_v27 = vmul.f32 %v1828_v24, %v2252_v22 }
 0x4a1   :  { %v1830_v18 = vpop.eup %1829  ;;  %1841 = vrcp.f32 %v996_v14 }
 0x4a2   :  { %v1014_v26 = vmul.f32 %v1830_v18, %v958_v38 }
 0x4a4   :  { %1707 = vmatprep.mubr.msk.f32.mxu1 %vm590_vm2, %v1014_v26  ;;  %v1832_v28 = vpop.eup %1831 }
 0x4a5   :  { %1708 = vmatmul.mubr.msk.f32.vlgmr.msra.gmra.mxu1 %vm590_vm2, %v1015_v27  ;;  %v1017_v31 = vmul.f32 %v1832_v28, %v961_v40 }
 0x4a6   :  { %v1834_v29 = vpop.eup %1833 }
 0x4a7   :  { %v1016_v30 = vmul.f32 %v1834_v29, %v960_v56 }
 0x4a8   :  { %v1836_v32 = vpop.eup %1835 }
 0x4a9   :  { %1710 = vmatprep.mubr.msk.f32.mxu1 %vm590_vm2, %v1016_v30  ;;  %v1019_v34 = vmul.f32 %v1836_v32, %v963_v1 }
 0x4aa   :  { %v1838_v33 = vpop.eup %1837  ;;  %1711 = vmatmul.mubr.msk.f32.gmra.mxu1 %vm590_vm2, %v1017_v31 }
 0x4ab   :  { %v1018_v19 = vmul.f32 %v1838_v33, %v962_v13 }
 0x4ac   :  { %v1840_v35 = vpop.eup %1839 }
 0x4ad   :  { %1713 = vmatprep.mubr.msk.f32.mxu1 %vm590_vm2, %v1018_v19  ;;  %v1021_v37 = vmul.f32 %v1840_v35, %v965_v51 }
 0x4ae   :  { %v1842_v22 = vpop.eup %1841  ;;  %1714 = vmatmul.mubr.msk.f32.gmra.mxu1 %vm590_vm2, %v1019_v34 }
 0x4af   :  { %v1020_v36 = vmul.f32 %v1842_v22, %v964_v58 }
 0x4b1   :  { %1716 = vmatprep.mubr.msk.f32.mxu1 %vm590_vm2, %v1020_v36 }
 0x4b2   :  { %1717 = vmatmul.mubr.msk.f32.gmra.mxu1 %vm590_vm2, %v1021_v37 }
 0x565   :  { %v1709_v38 = vpop.f32.mrf.mxu1 }
 0x566   :  { %v2265_v46 = vadd.f32 %v1709_v38, %v2145_v0 }
 0x567   :  { %v1121_v39 = vpop.f32.mrf.mxu1 }
 0x568   :  { %v2268_v40 = vadd.f32 %v1121_v39, %v2148_v3  ;;  %v1169_v41 = vmul.f32 %v2265_v46, %v2265_v46 }
 0x56a   :  { %v1712_v42 = vpop.f32.mrf.mxu1  ;;  %v1179_v43 = vsel %vm182_vm1, %v1169_v41, 0.0  ;;  %v1168_v56 = vmul.f32 %v2268_v40, %v2268_v40 }
 0x56b   :  { %v2276_v49 = vadd.f32 %v1712_v42, %v2156_v9  ;;  %1180 = vadd.xlane.f32.xlu1 %v1179_v43 }
 0x56c   :  { %v1131_v52 = vpop.f32.mrf.mxu1  ;;  %v1176_v0 = vsel %vm182_vm1, %v1168_v56, 0.0 }
 0x56d   :  { %v2280_v44 = vadd.f32 %v1131_v52, %v2160_v17  ;;  %1177 = vadd.xlane.f32.xlu0 %v1176_v0  ;;  %v1171_v3 = vmul.f32 %v2276_v49, %v2276_v49 }
 0x56e   :  { %v1715_v1 = vpop.f32.mrf.mxu1 }
 0x56f   :  { %v2285_v45 = vadd.f32 %v1715_v1, %v2165_v21  ;;  %v1185_v13 = vsel %vm182_vm1, %v1171_v3, 0.0  ;;  %v1170_v9 = vmul.f32 %v2280_v44, %v2280_v44  ;;  %v1366_v3 = vld [vmem:[%s2369_s2 + $0x8] sm:$0xff] }
 0x570   :  { %v1141_v61 = vpop.f32.mrf.mxu1 }
 0x571   :  { %v2291_v6 = vadd.f32 %v1141_v61, %v2171_v25  ;;  %1186 = vadd.xlane.f32.xlu0 %v1185_v13  ;;  %v1173_v17 = vmul.f32 %v2285_v45, %v2285_v45  ;;  %v1182_v53 = vsel %vm182_vm1, %v1170_v9, 0.0 }
 0x572   :  { %v1718_v47 = vpop.f32.mrf.mxu1 }
 0x573   :  { %v2296_v48 = vadd.f32 %v1718_v47, %v2177_v12  ;;  %v1191_v21 = vsel %vm182_vm1, %v1173_v17, 0.0  ;;  %v1172_v54 = vmul.f32 %v2291_v6, %v2291_v6  ;;  %v1368_v47 = vld [vmem:[%s2369_s2 + $0x18] sm:$0xff] }
 0x574   :  { %1192 = vadd.xlane.f32.xlu1 %v1191_v21  ;;  %v1151_v51 = vpop.f32.mrf.mxu1  ;;  %v1367_v21 = vld [vmem:[%s2369_s2 + $0x10] sm:$0xff] }
 0x575   :  { %v2303_v25 = vadd.f32 %v1151_v51, %v2183_v15  ;;  %1183 = vadd.xlane.f32.xlu0 %v1182_v53  ;;  %v1175_v57 = vmul.f32 %v2296_v48, %v2296_v48  ;;  %v1188_v12 = vsel %vm182_vm1, %v1172_v54, 0.0  ;;  %v1235_v15 = vld [vmem:[%s2374_s7 + $0x18] sm:$0xff]  ;;  %v1370_v54 = vld [vmem:[%s2369_s2 + $0x28] sm:$0xff] }
 0x576   :  { %1719 = vmatprep.subr.mxu0 %v1235_v15 }
 0x577   :  { %v1197_v58 = vsel %vm182_vm1, %v1175_v57, 0.0  ;;  %v1174_v59 = vmul.f32 %v2303_v25, %v2303_v25  ;;  %1720 = vmatpush3.msra.mxu0 %v1235_v15 }
 0x578   :  { %1198 = vadd.xlane.f32.xlu1 %v1197_v58  ;;  %1721 = vmatprep.subr.mxu0 %v1234_v50 }
 0x579   :  { %1189 = vadd.xlane.f32.xlu0 %v1188_v12  ;;  %v1194_v55 = vsel %vm182_vm1, %v1174_v59, 0.0  ;;  %1722 = vmatpush3.msra.mxu0 %v1234_v50  ;;  %v1369_v12 = vld [vmem:[%s2369_s2 + $0x20] sm:$0xff]  ;;  %v1372_v50 = vld [vmem:[%s2369_s2 + $0x38] sm:$0xff] }
 0x57a   :  { %1723 = vmatprep.subr.mxu0 %v1233_v62 }
 0x57b   :  { %1724 = vmatpush3.msra.mxu0 %v1233_v62 }
 0x57c   :  { %1725 = vmatprep.subr.mxu0 %v1232_v63 }
 0x57d   :  { %1195 = vadd.xlane.f32.xlu0 %v1194_v55  ;;  %1726 = vmatpush3.msra.mxu0 %v1232_v63 }
 0x5f4   :  { %v1181_v60 = vpop.xlane.xlu1 %1180 }
 0x5f5   :  { %v1201_v2 = vmul.f32 0.03125, %v1181_v60 }
 0x5f6   :  { %v1178_v4 = vpop.xlane.xlu0 %1177 }
 0x5f7   :  { %v1209_v5 = vadd.f32 1e-06, %v1201_v2  ;;  %v1200_v7 = vmul.f32 0.03125, %v1178_v4  ;;  %v1371_v2 = vld [vmem:[%s2369_s2 + $0x30] sm:$0xff] }
 0x5f9   :  { %v1208_v8 = vadd.f32 1e-06, %v1200_v7  ;;  %1843 = vrsqrt.f32 %v1209_v5 }
 0x5fa   :  { %v1187_v16 = vpop.xlane.xlu0 %1186 }
 0x5fb   :  { %1845 = vrsqrt.f32 %v1208_v8  ;;  %v1203_v10 = vmul.f32 0.03125, %v1187_v16 }
 0x5fd   :  { %v1193_v11 = vpop.xlane.xlu1 %1192  ;;  %v1211_v20 = vadd.f32 1e-06, %v1203_v10 }
 0x5fe   :  { %v1205_v23 = vmul.f32 0.03125, %v1193_v11  ;;  %v1184_v14 = vpop.xlane.xlu0 %1183 }
 0x5ff   :  { %v1202_v24 = vmul.f32 0.03125, %v1184_v14  ;;  %1847 = vrsqrt.f32 %v1211_v20 }
 0x600   :  { %v1213_v27 = vadd.f32 1e-06, %v1205_v23 }
 0x601   :  { %v1210_v18 = vadd.f32 1e-06, %v1202_v24  ;;  %v1199_v26 = vpop.xlane.xlu1 %1198 }
 0x602   :  { %v1207_v28 = vmul.f32 0.03125, %v1199_v26  ;;  %v1190_v29 = vpop.xlane.xlu0 %1189 }
 0x603   :  { %1849 = vrsqrt.f32 %v1210_v18  ;;  %v1204_v30 = vmul.f32 0.03125, %v1190_v29 }
 0x604   :  { %1851 = vrsqrt.f32 %v1213_v27  ;;  %v1215_v32 = vadd.f32 1e-06, %v1207_v28 }
 0x605   :  { %v1212_v31 = vadd.f32 1e-06, %v1204_v30 }
 0x606   :  { %v1196_v33 = vpop.xlane.xlu0 %1195  ;;  %v1844_v19 = vpop.eup %1843 }
 0x607   :  { %1853 = vrsqrt.f32 %v1212_v31  ;;  %v1206_v34 = vmul.f32 0.03125, %v1196_v33  ;;  %v1225_v37 = vmul.f32 %v1844_v19, %v2265_v46 }
 0x608   :  { %v1846_v35 = vpop.eup %1845  ;;  %1855 = vrsqrt.f32 %v1215_v32 }
 0x609   :  { %v1214_v22 = vadd.f32 1e-06, %v1206_v34  ;;  %v1224_v36 = vmul.f32 %v1846_v35, %v2268_v40 }
 0x60b   :  { %1857 = vrsqrt.f32 %v1214_v22  ;;  %1727 = vmatprep.mubr.msk.f32.mxu0 %vm182_vm1, %v1224_v36 }
 0x60c   :  { %1728 = vmatmul.mubr.msk.f32.vlgmr.msra.gmra.mxu0 %vm182_vm1, %v1225_v37  ;;  %v1848_v38 = vpop.eup %1847 }
 0x60d   :  { %v1227_v42 = vmul.f32 %v1848_v38, %v2276_v49 }
 0x610   :  { %v1850_v39 = vpop.eup %1849 }
 0x611   :  { %v1226_v41 = vmul.f32 %v1850_v39, %v2280_v44  ;;  %v1852_v43 = vpop.eup %1851 }
 0x612   :  { %v1229_v40 = vmul.f32 %v1852_v43, %v2285_v45  ;;  %v1365_v45 = vld [vmem:[%s2369_s2] sm:$0xff] }
 0x613   :  { %1730 = vmatprep.mubr.msk.f32.mxu0 %vm182_vm1, %v1226_v41 }
 0x614   :  { %v1854_v56 = vpop.eup %1853  ;;  %1731 = vmatmul.mubr.msk.f32.gmra.mxu0 %vm182_vm1, %v1227_v42 }
 0x615   :  { %v1228_v46 = vmul.f32 %v1854_v56, %v2291_v6  ;;  %v1856_v52 = vpop.eup %1855 }
 0x616   :  { %v1231_v49 = vmul.f32 %v1856_v52, %v2296_v48 }
 0x617   :  { %1733 = vmatprep.mubr.msk.f32.mxu0 %vm182_vm1, %v1228_v46 }
 0x618   :  { %v1858_v0 = vpop.eup %1857  ;;  %1734 = vmatmul.mubr.msk.f32.gmra.mxu0 %vm182_vm1, %v1229_v40 }
 0x619   :  { %v1230_v44 = vmul.f32 %v1858_v0, %v2303_v25 }
 0x61b   :  { %1736 = vmatprep.mubr.msk.f32.mxu0 %vm182_vm1, %v1230_v44 }
 0x61c   :  { %1737 = vmatmul.mubr.msk.f32.gmra.mxu0 %vm182_vm1, %v1231_v49 }
 0x6cc   :  { %v1729_v1 = vpop.f32.mrf.mxu0 }
 0x6cd   :  { %v1374_v61 = vsub.f32 %v1729_v1, %v1366_v3 }
 0x6ce   :  { %v1326_v13 = vpop.f32.mrf.mxu0 }
 0x6cf   :  { %v1382_v9 = vmul.f32 %v1374_v61, %v1374_v61  ;;  %v1373_v6 = vsub.f32 %v1326_v13, %v1365_v45 }
 0x6d1   :  { %1390 = vst [vmem:[#allocation2 + $0x8] sm:$0xff] %v1382_v9  ;;  %v1381_v17 = vmul.f32 %v1373_v6, %v1373_v6 }
 0x6d3   :  { %1389 = vst [vmem:[#allocation2] sm:$0xff] %v1381_v17 }
 0x6d4   :  { %v1732_v48 = vpop.f32.mrf.mxu0 }
 0x6d5   :  { %v1376_v51 = vsub.f32 %v1732_v48, %v1368_v47 }
 0x6d6   :  { %v1336_v53 = vpop.f32.mrf.mxu0 }
 0x6d7   :  { %v1384_v25 = vmul.f32 %v1376_v51, %v1376_v51  ;;  %v1375_v57 = vsub.f32 %v1336_v53, %v1367_v21 }
 0x6d8   :  { %v1735_v58 = vpop.f32.mrf.mxu0 }
 0x6d9   :  { %1392 = vst [vmem:[#allocation2 + $0x18] sm:$0xff] %v1384_v25  ;;  %v1383_v59 = vmul.f32 %v1375_v57, %v1375_v57  ;;  %v1378_v55 = vsub.f32 %v1735_v58, %v1370_v54 }
 0x6da   :  { %v1346_v15 = vpop.f32.mrf.mxu0 }
 0x6db   :  { %1391 = vst [vmem:[#allocation2 + $0x10] sm:$0xff] %v1383_v59  ;;  %v1386_v62 = vmul.f32 %v1378_v55, %v1378_v55  ;;  %v1377_v63 = vsub.f32 %v1346_v15, %v1369_v12 }
 0x6dc   :  { %v1738_v60 = vpop.f32.mrf.mxu0 }
 0x6dd   :  { %1394 = vst [vmem:[#allocation2 + $0x28] sm:$0xff] %v1386_v62  ;;  %v1385_v4 = vmul.f32 %v1377_v63, %v1377_v63  ;;  %v1380_v5 = vsub.f32 %v1738_v60, %v1372_v50 }
 0x6de   :  { %v1356_v7 = vpop.f32.mrf.mxu0 }
 0x6df   :  { %1393 = vst [vmem:[#allocation2 + $0x20] sm:$0xff] %v1385_v4  ;;  %v1388_v8 = vmul.f32 %v1380_v5, %v1380_v5  ;;  %v1379_v16 = vsub.f32 %v1356_v7, %v1371_v2 }
 0x6e1   :  { %1396 = vst [vmem:[#allocation2 + $0x38] sm:$0xff] %v1388_v8  ;;  %v1387_v10 = vmul.f32 %v1379_v16, %v1379_v16 }
 0x6e3   :  { %1395 = vst [vmem:[#allocation2 + $0x30] sm:$0xff] %v1387_v10 }
 0x6e4   :  { %1870 = shalt.err (!%p1867_p4)
}
 0x6e5   :  { %s1883_s2 = smov 128   ;;  %s1884_s5 = smov 8  }
 0x6e6   :  { %1408 = dma.vmem_to_hbm [thread:$0]  %s1403_s16, 1024, %s2375_s8, [#allocation3], %s1883_s2, %s1883_s2, %s1884_s5  }
 0x6e7   :  { %1879 = dma.done.wait [#allocation3], 1024  }
 0x6e8   :  { %1880 = vsyncadd [#allocation3], 4294966272 }
 0x6e9   :  { %1412 = vsyncpa [#allocation3], 1 }

</bundles_post_ra>
